<compile_context>
chip_gen: v7x
topology: tpu7x:2x2x1
jax: 0.10.0
libtpu: 0.0.40
codegen_flags: <defaults>
</compile_context>

<pallas_src>
import jax
import jax.numpy as jnp
from jax import lax
from jax.experimental import pallas as pl
from jax.experimental.pallas import tpu as pltpu

CHANNELS = 4   # module arg `channels` (Cout)
KERNEL = 4     # kernel_size == stride


# --------------------------- fused conv kernel ------------------------------

def _fused_conv_kernel(w_ref, b_ref, x_ref, o_ref):
    """Fused im2col + strided conv for one (image, row-block) grid step.

    w_ref: SMEM (Cout*Cin*k*k,) f32  spectral-normalized weights, (cout,c,kh,kw) order
    b_ref: SMEM (Cout,)         f32
    x_ref: VMEM (Cin, hb, k*W)  f32  hb output rows' worth of raw input rows
    o_ref: VMEM (Cout, hb, Wo)       NCHW output block (lane dim = Wo)
    """
    k = KERNEL
    cin, hb, lanes = x_ref.shape            # lanes == k * W
    cout, _, wo_n = o_ref.shape             # wo_n == Wo
    w_img = lanes // k

    accs = [jnp.zeros((hb, wo_n), jnp.float32) for _ in range(cout)]
    for c in range(cin):
        for kh in range(k):
            for kw in range(k):
                # Lane de-interleave in VMEM: source lane (kh*W + wo*k + kw) -> dest lane wo.
                sub = x_ref[c, :, pl.ds(kh * w_img + kw, wo_n, stride=k)]   # (hb, Wo)
                j = (c * k + kh) * k + kw
                for co in range(cout):
                    accs[co] = accs[co] + w_ref[co * cin * k * k + j] * sub
    for co in range(cout):
        o_ref[co, :, :] = (accs[co] + b_ref[co]).astype(o_ref.dtype)


def _pick_row_block(ho, cin, k, w_img, budget_bytes=4 << 20):
    """Output rows per grid step.

    Preferences:
      * a multiple of 8 dividing Ho -> unmasked (8,128) output tiles and no
        remainder block (helps v5e's single vector-store slot);
      * input slab (cin*k*w_img*4 B per output row) capped at `budget_bytes` so
        2-3 pipeline buffers stay far inside even v7x's 64 MiB VMEM;
      * >=2 row blocks when possible so both v7x TensorCores get grid work.
    """
    per_row = cin * k * w_img * 4
    divs8 = [d for d in range(8, ho + 1, 8) if ho % d == 0]
    if not divs8:
        return ho                               # tiny image (demo: Ho=4): one block
    fit = [d for d in divs8 if d * per_row <= budget_bytes]
    if not fit:
        # TODO(synk): masked remainder block instead of the smallest divisor.
        return divs8[0]
    multi = [d for d in fit if ho // d >= 2]
    return max(multi) if multi else max(fit)


def conv_sample_fused(x, w_sn, bias, *, deep_buffer=False, out_dtype=jnp.float32):
    """Strided conv (kernel==stride==4) with im2col fused into the kernel.

    x: (N, Cin, H, W) f32, w_sn: (Cout, Cin, k, k), bias: (Cout,)
    Returns (N, Cout, Ho, Wo) in `out_dtype` (bf16 halves writeback if the
    downstream entropy bottleneck tolerates it; default keeps module f32).
    """
    n, cin, h, w_img = x.shape
    k = KERNEL
    cout = w_sn.shape[0]
    ho, wo = h // k, w_img // k
    # Free (contiguity-preserving) view: split H -> (Ho, k), merge (k, W) -> lanes.
    x3 = x[:, :, :ho * k, :].reshape(n, cin, ho, k * w_img)
    hb = _pick_row_block(ho, cin, k, w_img)

    w_flat = w_sn.reshape(-1).astype(jnp.float32)     # (Cout*Cin*k*k,) -> SMEM resident
    b_vec = bias.astype(jnp.float32)                  # (Cout,)         -> SMEM resident

    x_kwargs = dict(pipeline_mode=pl.Buffered(3)) if deep_buffer else {}
    cost = pl.CostEstimate(
        flops=2 * n * cout * ho * wo * cin * k * k,
        transcendentals=0,
        bytes_accessed=(x3.size * 4 + n * cout * ho * wo * jnp.dtype(out_dtype).itemsize
                        + w_flat.size * 4 + cout * 4),
    )
    return pl.pallas_call(
        _fused_conv_kernel,
        out_shape=jax.ShapeDtypeStruct((n, cout, ho, wo), out_dtype),
        grid=(n, ho // hb),
        in_specs=[
            pl.BlockSpec(memory_space=pltpu.MemorySpace.SMEM),          # weights
            pl.BlockSpec(memory_space=pltpu.MemorySpace.SMEM),          # bias
            pl.BlockSpec((None, cin, hb, k * w_img),
                         lambda ni, ri: (ni, 0, ri, 0), **x_kwargs),    # raw rows
        ],
        out_specs=pl.BlockSpec((None, cout, hb, wo),
                               lambda ni, ri: (ni, 0, ri, 0)),
        compiler_params=pltpu.CompilerParams(
            dimension_semantics=("parallel", "parallel")),
        cost_estimate=cost,
    )(w_flat, b_vec, x3)


# --------------------- fallback: patch-matmul kernel (v1) --------------------

def _patch_matmul_kernel(w_ref, b_ref, p_ref, o_ref):
    # w_ref: (Cout, K) f32, b_ref: (Cout, 1) f32, p_ref: (K, mt) f32, o_ref: (Cout, mt)
    o_ref[...] = (jnp.dot(w_ref[...], p_ref[...], preferred_element_type=jnp.float32)
                  + b_ref[...]).astype(o_ref.dtype)


def _pick_tile(m):
    for t in (8192, 4096, 2048, 1024, 512, 256, 128):
        if m % t == 0:
            return t
    return m   # TODO(synk): masked remainder tile for large, non-128-divisible Ho*Wo


def conv_sample_unfused(x, w_sn, bias, *, out_dtype=jnp.float32):
    """Known-good fallback path: XLA-side im2col + lane-dense matmul kernel."""
    n, cin, h, w_img = x.shape
    k = KERNEL
    cout = w_sn.shape[0]
    ho, wo = h // k, w_img // k
    m = ho * wo
    xp = x[:, :, :ho * k, :wo * k].reshape(n, cin, ho, k, wo, k)
    patches = xp.transpose(0, 1, 3, 5, 2, 4).reshape(n, cin * k * k, m)
    w2d = w_sn.reshape(cout, -1).astype(jnp.float32)
    bcol = bias.reshape(cout, 1).astype(jnp.float32)
    mt = _pick_tile(m)
    y = pl.pallas_call(
        _patch_matmul_kernel,
        out_shape=jax.ShapeDtypeStruct((n, cout, m), out_dtype),
        grid=(n, m // mt),
        in_specs=[
            pl.BlockSpec((cout, cin * k * k), lambda ni, mi: (0, 0)),
            pl.BlockSpec((cout, 1), lambda ni, mi: (0, 0)),
            pl.BlockSpec((None, cin * k * k, mt), lambda ni, mi: (ni, 0, mi)),
        ],
        out_specs=pl.BlockSpec((None, cout, mt), lambda ni, mi: (ni, 0, mi)),
        compiler_params=pltpu.CompilerParams(
            dimension_semantics=("parallel", "parallel")),
    )(w2d, bcol, patches)
    return y.reshape(n, cout, ho, wo)


# --------------------------- path selection ----------------------------------

_CONV_MODE = None   # "fused_deep" | "fused" | "unfused"


def _select_conv_impl():
    """One-time probe: prefer the fused kernel (with 3-deep input buffering),
    validated for both lowering and numerics; otherwise fall back."""
    global _CONV_MODE
    if _CONV_MODE is not None:
        return _CONV_MODE
    with jax.ensure_compile_time_eval():
        kx, kw_, kb = jax.random.split(jax.random.PRNGKey(123), 3)
        xp = jax.random.normal(kx, (1, 3, 16, 16), jnp.float32)
        wp = 0.1 * jax.random.normal(kw_, (CHANNELS, 3, KERNEL, KERNEL), jnp.float32)
        bp = 0.1 * jax.random.normal(kb, (CHANNELS,), jnp.float32)
        ref = lax.conv_general_dilated(
            xp, wp, (KERNEL, KERNEL), 'VALID',
            dimension_numbers=('NCHW', 'OIHW', 'NCHW')) + bp.reshape(1, -1, 1, 1)
        for mode, deep in (("fused_deep", True), ("fused", False)):
            try:
                got = jax.block_until_ready(
                    conv_sample_fused(xp, wp, bp, deep_buffer=deep))
                if float(jnp.max(jnp.abs(got - ref))) < 1e-3:
                    _CONV_MODE = mode
                    return _CONV_MODE
            except Exception:
                pass
        # TODO(synk): fallback for toolchains without strided lane loads.
        _CONV_MODE = "unfused"
        return _CONV_MODE


def conv_sample(x, w_sn, bias):
    mode = _select_conv_impl()
    if mode == "fused_deep":
        return conv_sample_fused(x, w_sn, bias, deep_buffer=True)
    if mode == "fused":
        return conv_sample_fused(x, w_sn, bias, deep_buffer=False)
    return conv_sample_unfused(x, w_sn, bias)


# ------------------------------ forward pass ---------------------------------

def lightweight_encoder_forward(x, weight, bias, u0):
    """Mirrors LightweightEncoder.forward -> (y, bits_act, bits_est, aux_loss)."""
    cout, cin, k, _ = weight.shape

    # ---- spectral_norm(weight): one power iteration on the stored buffer u ----
    w_mat = weight.reshape(cout, -1)

    def _l2n(v):
        return v / (jnp.linalg.norm(v) + 1e-12)

    u = _l2n(u0)
    v = lax.stop_gradient(_l2n(w_mat.T @ u))
    u = lax.stop_gradient(_l2n(w_mat @ v))
    sigma = u @ (w_mat @ v)
    w_sn = weight / sigma
    # TODO(synk): PyTorch's spectral_norm persists the updated `u` buffer across
    # steps; thread the new u back to the caller for exact multi-step parity.

    # ---- x = self.sample(x): fused strided-conv Pallas kernel ----
    y = conv_sample(x, w_sn, bias)

    # TODO(synk): EntropyBottleneck2 is not defined in the reference source; its
    # quantization / likelihoods / get_actual_bits / loss are omitted, so
    # bits_act, bits_est and the bottleneck share of aux_loss are placeholders.
    bits_est = jnp.zeros((), jnp.float32)
    bits_act = jnp.zeros((), jnp.float32)

    # ---- orthorgonal_regularizer(self.sample.weight, 1e-4): 192 elems, plain JAX ----
    wb = w_sn.reshape(cout * cin, k, k)
    ws = jnp.einsum('bij,bkj->bik', wb, wb)              # batched w @ w^T
    mask = jnp.ones((k, k), jnp.float32) - jnp.eye(k, dtype=jnp.float32)
    aux_loss = jnp.sum((ws * mask) ** 2) * 1e-4
    return y, bits_act, bits_est, aux_loss


# ----------------------------------- main ------------------------------------

if __name__ == "__main__":
    key = jax.random.PRNGKey(0)
    k1, k2, k3, k4 = jax.random.split(key, 4)

    N, Cin, H, W = 2, 3, 16, 16                    # conv in_channels is fixed at 3
    x = jax.random.normal(k1, (N, Cin, H, W), jnp.float32)
    weight = 0.1 * jax.random.normal(k2, (CHANNELS, Cin, KERNEL, KERNEL), jnp.float32)
    bias = 0.1 * jax.random.normal(k3, (CHANNELS,), jnp.float32)
    u0 = jax.random.normal(k4, (CHANNELS,), jnp.float32)

    _select_conv_impl()                            # choose the kernel path outside jit

    fwd = jax.jit(lightweight_encoder_forward)
    y, bits_act, bits_est, aux_loss = fwd(x, weight, bias, u0)
    jax.block_until_ready((y, bits_act, bits_est, aux_loss))

    assert y.shape == (N, CHANNELS, H // KERNEL, W // KERNEL)

    # numerical check of the conv path against XLA's conv with the same spectral norm
    w_mat = weight.reshape(CHANNELS, -1)
    u = u0 / (jnp.linalg.norm(u0) + 1e-12)
    v = w_mat.T @ u
    v = v / (jnp.linalg.norm(v) + 1e-12)
    u = w_mat @ v
    u = u / (jnp.linalg.norm(u) + 1e-12)
    sigma = u @ (w_mat @ v)
    w_sn_ref = weight / sigma
    y_ref = lax.conv_general_dilated(
        x, w_sn_ref, window_strides=(KERNEL, KERNEL), padding='VALID',
        dimension_numbers=('NCHW', 'OIHW', 'NCHW')) + bias.reshape(1, CHANNELS, 1, 1)
    # fused path is f32-exact; loose bound also covers the MXU fallback path
    assert jnp.max(jnp.abs(y - y_ref)) < 5e-2

    print("KERNEL_OK")
</pallas_src>

<mosaic_0001>
module attributes {stable_mosaic.version = 11 : i64} {
  func.func @_patch_matmul_kernel(%arg0: i32, %arg1: i32, %arg2: memref<4x48xf32, #tpu.memory_space<vmem>>, %arg3: memref<4x1xf32, #tpu.memory_space<vmem>>, %arg4: memref<1x48x16xf32, #tpu.memory_space<vmem>>, %arg5: memref<1x4x16xf32, #tpu.memory_space<vmem>>) attributes {dimension_semantics = [#tpu.dimension_semantics<parallel>, #tpu.dimension_semantics<parallel>], iteration_bounds = array<i64: 2, 1>, scalar_prefetch = 0 : i64, scratch_operands = 0 : i64, tpu.core_type = #tpu.core_type<tc>, window_params = [{pipeline_mode = #tpu.pipeline_mode<synchronous>, transform_indices = @transform_0, window_bounds = array<i64: 4, 48>}, {pipeline_mode = #tpu.pipeline_mode<synchronous>, transform_indices = @transform_1, window_bounds = array<i64: 4, 1>}, {transform_indices = @transform_2, window_bounds = array<i64: 1, 48, 16>}, {transform_indices = @transform_3, window_bounds = array<i64: 1, 4, 16>}]} {
    %c0 = arith.constant 0 : index
    %c0_0 = arith.constant 0 : index
    %0 = vector.load %arg2[%c0, %c0_0] : memref<4x48xf32, #tpu.memory_space<vmem>>, vector<4x48xf32>
    %c0_1 = arith.constant 0 : index
    %c0_2 = arith.constant 0 : index
    %c0_3 = arith.constant 0 : index
    %1 = vector.load %arg4[%c0_1, %c0_2, %c0_3] : memref<1x48x16xf32, #tpu.memory_space<vmem>>, vector<1x48x16xf32>
    %2 = vector.shape_cast %1 : vector<1x48x16xf32> to vector<48x16xf32>
    %cst = arith.constant dense<0.000000e+00> : vector<4x16xf32>
    %3 = tpu.matmul %0, %2, %cst {dimension_numbers = #tpu.dot_dimension_numbers<[1], [0], [0], [1], [0, 0, 1, 1], [], []>} : vector<4x48xf32>, vector<48x16xf32>, vector<4x16xf32> -> vector<4x16xf32>
    %c0_4 = arith.constant 0 : index
    %c0_5 = arith.constant 0 : index
    %4 = vector.load %arg3[%c0_4, %c0_5] : memref<4x1xf32, #tpu.memory_space<vmem>>, vector<4x1xf32>
    %5 = vector.broadcast %4 : vector<4x1xf32> to vector<4x16xf32>
    %6 = arith.addf %3, %5 : vector<4x16xf32>
    %c0_6 = arith.constant 0 : index
    %c0_7 = arith.constant 0 : index
    %c0_8 = arith.constant 0 : index
    %7 = vector.load %arg5[%c0_6, %c0_7, %c0_8] : memref<1x4x16xf32, #tpu.memory_space<vmem>>, vector<1x4x16xf32>
    %8 = vector.shape_cast %7 : vector<1x4x16xf32> to vector<4x16xf32>
    %9 = vector.shape_cast %6 : vector<4x16xf32> to vector<1x4x16xf32>
    tpu.vector_store %arg5[%c0_6, %c0_7, %c0_8], %9 {strides = array<i32>} : memref<1x4x16xf32, #tpu.memory_space<vmem>>, vector<1x4x16xf32>,
    return
  }
  func.func @transform_0(%arg0: i32, %arg1: i32) -> (i32, i32) {
    %c0_i32 = arith.constant 0 : i32
    %c0_i32_0 = arith.constant 0 : i32
    %c0_i32_1 = arith.constant 0 : i32
    return %c0_i32, %c0_i32_0 : i32, i32
  }
  func.func @transform_1(%arg0: i32, %arg1: i32) -> (i32, i32) {
    %c0_i32 = arith.constant 0 : i32
    %c0_i32_0 = arith.constant 0 : i32
    %c0_i32_1 = arith.constant 0 : i32
    return %c0_i32, %c0_i32_0 : i32, i32
  }
  func.func @transform_2(%arg0: i32, %arg1: i32) -> (i32, i32, i32) {
    %c0_i32 = arith.constant 0 : i32
    %c0_i32_0 = arith.constant 0 : i32
    return %arg0, %c0_i32, %arg1 : i32, i32, i32
  }
  func.func @transform_3(%arg0: i32, %arg1: i32) -> (i32, i32, i32) {
    %c0_i32 = arith.constant 0 : i32
    %c0_i32_0 = arith.constant 0 : i32
    return %arg0, %c0_i32, %arg1 : i32, i32, i32
  }
}

</mosaic_0001>

<bundles_post_ra>
// kernel: lightweight_encoder_forward.1
= control target key start
LH: loop header
LB: loop body
LE: loop exit
PB: predicated region body
PF: predicated region fallthrough
CT: control target
= control target key end

     0   :  { %s485_s12 = smov 0   ;;  %s487_s13 = smov 0   ;;  %s524_s0 = inlined_call_operand.vmem [shape: f32[4,48], index: 0, kind: input, shape index: {}]   ;;  %s525_s1 = inlined_call_operand.vmem [shape: f32[4,1], index: 1, kind: input, shape index: {}]   ;;  %s526_s2 = inlined_call_operand.vmem [shape: f32[2,48,16], index: 2, kind: input, shape index: {}]   ;;  %s527_s3 = inlined_call_operand.vmem [shape: f32[2,4,16], index: 3, kind: output, shape index: {}]  }
   0x1   :  { %s489_s14 = smov 0  }
   0x2 LB: > { %s25_s15 = sadd.s32 1, %s455_s13  ;;  %p370_p0 = scmp.ge.s32.totalorder %s459_s14, 1  ;;  %s459_s14 = sphi %s489_s14, %s13_s14   ;;  %s455_s13 = sphi %s487_s13, %s529_s13   ;;  %s451_s12 = sphi %s485_s12, %s528_s12  }
   0x3   : > { %p27_p1 = scmp.ge.s32.totalorder %s25_s15, 2  ;;  %p156_p2 = scmp.lt.s32.totalorder %s459_s14, 3 }
   0x5   : > { %s531_s15 = smov (%p27_p1, %s25_s15), 0  ;;  %p157_p3 = pnand %p370_p0, %p156_p2 }
   0x6   : > { %p185_p4 = scmp.lt.s32.totalorder (!%p157_p3), %s451_s12, 1  ;;  %v461_v0 = vmov (!%p157_p3), 0.0|0.0   ;;  %vm462_vm0 = vmmov (!%p157_p3), 0   ;;  %v463_v1 = vmov (!%p157_p3), 0.0   ;;  %v207_v2 = vld [vmem:[%s525_s1] sm:$0xf] (!%p157_p3) }
   0x7   : > { %160 = sbr.rel (%p157_p3) target bundleno = 247 (0xf7), region = 32  ;;  %398 = vmatprep.subr.bf16.mxu0 (!%p157_p3), %v461_v0  ;;  %395 = vmatprep.mubr.msk.f32.mxu0 (!%p157_p3), %vm462_vm0, %v463_v1  ;;  %v464_v3 = vmov (!%p157_p3), 0   ;;  %v200_v13 = vld [vmem:[%s524_s0] sm:$0xf] (!%p157_p3)  ;;  %vm213_vm1 = vcmask (!%p157_p3), 392192   ;;  %vm287_vm2 = vcmask (!%p157_p3), 125952  }
   0x8   : > { %436 = vset.pattern.permute.xlu0 (!%p157_p3), %v464_v3 }
   0x9   : > { %210 = vperm.xlu0 (!%p157_p3), %436, %v207_v2  }
   0xe   : > { %s533_s12 = smov (!%p185_p4, %s451_s12), 1 }
   0xf   : > { %s407_s18 = smul.u32 48, %s533_s12  ;;  %s372_s24 = sshll.u32 %s533_s12, 2 }
  0x10   : > { %s199_s27 = scalar_lea.vmem %s527_s3, %s372_s24 }
  0x11   : > { %s192_s21 = scalar_lea.vmem %s526_s2, %s407_s18 }
  0x12   : > { %v201_v4 = vld [vmem:[%s192_s21] sm:$0xff]  ;;  %v202_v5 = vld [vmem:[%s192_s21 + $0x8] sm:$0xff]  ;;  %v203_v6 = vld [vmem:[%s192_s21 + $0x10] sm:$0xff] }
  0x13   : > { %v399_v7 = vpack.c.bf16 %v202_v5, %v201_v4  ;;  %v204_v8 = vld [vmem:[%s192_s21 + $0x18] sm:$0xff]  ;;  %v205_v10 = vld [vmem:[%s192_s21 + $0x20] sm:$0xff]  ;;  %v206_v11 = vld [vmem:[%s192_s21 + $0x28] sm:$0xff] }
  0x14   : > { %v402_v9 = vpack.c.bf16 %v204_v8, %v203_v6  ;;  %v405_v12 = vpack.c.bf16 %v206_v11, %v205_v10 }
  0x15   : > { %400 = vmatpush3.bf16.msra.mxu0 %v399_v7 }
  0x16   : > { %401 = vmatprep.subr.bf16.mxu0 %v461_v0 }
  0x19   : > { %403 = vmatpush3.bf16.msra.mxu0 %v402_v9 }
  0x1a   : > { %404 = vmatprep.subr.bf16.mxu0 %v461_v0 }
  0x1d   : > { %406 = vmatpush3.bf16.msra.mxu0 %v405_v12 }
  0x20   : > { %396 = vmatmul.mubr.msk.f32.vlgmr.msra.gmra.mrb[0].mxu0 %vm213_vm1, %v200_v13 }
  0x88   : > { %v211_v14 = vpop.permute.xlu0 %210 }
  0xf3   : > { %v283_v15 = vpop.f32.mrb[0].mxu0 }
  0xf4   : > { %v284_v16 = vadd.f32 %v283_v15, %v211_v14  ;;  %v397_v17 = vpop.f32.mrb[1].mxu0 }
  0xf6   : > { %288 = vst.msk [vmem:[%s199_s27] sm:$0xf] %vm287_vm2, %v284_v16 }
  0xf7 PF: > { %s13_s14 = sadd.s32 1, %s459_s14   ;;  %s528_s12 = smov %s455_s13 }
  0xf8   : > { %p10_p5 = scmp.ge.s32.totalorder %s13_s14, 4   ;;  %s529_s13 = smov %s531_s15 }
  0xfa   :  { %12 = sbr.rel (!%p10_p5) target bundleno = 2 (0x2), region = 62 }

</bundles_post_ra>
